<compile_context>
chip_gen: v6e
topology: v6e:2x2x1
jax: 0.10.0
libtpu: 0.0.40
codegen_flags: <defaults>
</compile_context>

<pallas_src>
import functools

import jax
import jax.numpy as jnp
from jax.experimental import pallas as pl
from jax.experimental.pallas import tpu as pltpu


def _round_up(a, b):
    return (a + b - 1) // b * b


def _leaky_relu(x):
    return jnp.where(x >= 0, x, 0.2 * x)


def _fold_lanes(a):
    """Pairwise-fold the lane axis of (R, TM) down to (R, 128) with pure VPU adds.

    Requires TM == 128 * 2^k; every slice is 128-lane aligned so there is no
    relayout and no per-tile XLU cross-lane reduction (that reduce is deferred
    to the tiny combine step in plain JAX)."""
    while a.shape[1] > 128:
        half = a.shape[1] // 2
        a = a[:, :half] + a[:, half:]
    return a


def _stats_kernel(x_ref, w1_ref, b1_ref, w2_ref, b2_ref, o_ref,
                  *, hw, tm, ndf2, needs_mask):
    t = pl.program_id(1)

    x = x_ref[0]                                           # (C, TM) f32, pixels on lanes
    # conv1 (1x1) + bias + LeakyReLU.  Kept on the MXU: with C=3-4 the push count
    # is tiny and the MXU has slack (the kernel is VPU-bound at ndf=64).
    h1 = jnp.dot(w1_ref[...], x.astype(jnp.bfloat16),
                 preferred_element_type=jnp.float32) + b1_ref[...]
    h1 = _leaky_relu(h1)
    # conv2 (1x1) + bias: the FLOP-dominant matmul, bf16 single-pass MXU, f32 acc.
    h2 = jnp.dot(w2_ref[...], h1.astype(jnp.bfloat16),
                 preferred_element_type=jnp.float32) + b2_ref[...]

    if needs_mask:
        lane = jax.lax.broadcasted_iota(jnp.int32, (1, tm), 1)
        valid = (t * tm + lane) < hw                       # (1, TM)
        # jnp.where (not mask-multiply) so padded-garbage lanes can never poison
        # the statistics with NaN/Inf.
        h2s = jnp.where(valid, h2, 0.0)
        h2q = jnp.where(valid, h2 * h2, 0.0)
    else:
        h2s = h2
        h2q = h2 * h2

    # Lane-wide partial sums (sum on top, sum-of-squares below), VPU-only per tile.
    o_ref[0, 0, :ndf2, :] = _fold_lanes(h2s)
    o_ref[0, 0, ndf2:, :] = _fold_lanes(h2q)


def _apply_kernel(x_ref, w1_ref, b1_ref, w2_ref, b2_ref,
                  scale_ref, shift_ref, w3_ref, b3_ref, o_ref):
    x = x_ref[0]                                           # (C, TM)
    h1 = jnp.dot(w1_ref[...], x.astype(jnp.bfloat16),
                 preferred_element_type=jnp.float32) + b1_ref[...]
    h1 = _leaky_relu(h1)
    h2 = jnp.dot(w2_ref[...], h1.astype(jnp.bfloat16),
                 preferred_element_type=jnp.float32) + b2_ref[...]
    # Fused BatchNorm (training-mode batch stats, folded to scale/shift) + LeakyReLU.
    h2n = _leaky_relu(h2 * scale_ref[...] + shift_ref[...])
    # conv3 (1x1, single output channel): per-channel weighted sum on the VPU/XLU;
    # a 1-row MXU matmul buys nothing here and would need another bf16 cast of h2n.
    out = jnp.sum(h2n * w3_ref[...], axis=0, keepdims=True) + b3_ref[...]
    o_ref[...] = out[None].astype(o_ref.dtype)             # (1, 1, TM) lane-dense store


def _device_defaults():
    """Generation-aware (pixel-tile cap, vmem_limit_bytes).

    v5e/v6e have 128 MiB VMEM per TensorCore -> 16K-pixel tiles, 80 MB limit.
    v7x has only 64 MiB -> 8K tiles, 48 MB limit (also the safe fallback)."""
    try:
        vmem = pltpu.get_tpu_info().vmem_capacity_bytes
    except Exception:  # best-effort query; fall back to the conservative choice
        vmem = None
    if vmem is not None and vmem > 96 * 1024 * 1024:
        return 16384, 80 * 1024 * 1024
    return 8192, 48 * 1024 * 1024


def pixel_discriminator(x_nchw, params, *, tm_max=None):
    """x_nchw: (N, C, H, W) float32. Returns (N, 1, H, W)."""
    n, c, h, w = x_nchw.shape
    hw = h * w
    w1, b1, w2, b2, gamma, beta, w3, b3 = params
    ndf2 = gamma.shape[0]
    eps = 1e-5

    default_tm, vmem_limit = _device_defaults()
    if tm_max is None:
        tm_max = default_tm

    # Pixel tile: largest 128 * 2^k under the cap.  No padded HBM copy of x.
    hw128 = _round_up(hw, 128)
    tm = 128
    while tm * 2 <= min(tm_max, hw128):
        tm *= 2
    n_tiles = pl.cdiv(hw, tm)
    hw_pad = n_tiles * tm
    needs_mask = hw_pad != hw

    x_view = x_nchw.reshape(n, c, hw)          # NCHW kept; free reshape, no transpose
    w1_b = w1.astype(jnp.bfloat16)             # one-time weight casts (tiny)
    w2_b = w2.astype(jnp.bfloat16)

    cparams = pltpu.CompilerParams(
        dimension_semantics=("parallel", "parallel"),
        vmem_limit_bytes=vmem_limit,
    )

    def resident(arr):
        nd = arr.ndim
        return pl.BlockSpec(arr.shape, lambda b, t: (0,) * nd)

    x_spec = pl.BlockSpec((1, c, tm), lambda b, t: (b, 0, t))

    # Pass 1: per-(batch, tile) lane-wide BN partial sums; fully parallel grid.
    stats = pl.pallas_call(
        functools.partial(_stats_kernel, hw=hw, tm=tm, ndf2=ndf2,
                          needs_mask=needs_mask),
        out_shape=jax.ShapeDtypeStruct((n, n_tiles, 2 * ndf2, 128), jnp.float32),
        grid=(n, n_tiles),
        in_specs=[x_spec, resident(w1_b), resident(b1), resident(w2_b), resident(b2)],
        out_specs=pl.BlockSpec((1, 1, 2 * ndf2, 128), lambda b, t: (b, t, 0, 0)),
        compiler_params=cparams,
    )(x_view, w1_b, b1, w2_b, b2)

    # Tiny combine in plain JAX (all BN math in f32): partials -> scale/shift.
    m_total = float(n * hw)
    sums = jnp.sum(stats[:, :, :ndf2, :], axis=(0, 1, 3))
    sqs = jnp.sum(stats[:, :, ndf2:, :], axis=(0, 1, 3))
    mean = sums / m_total
    var = sqs / m_total - mean * mean                      # biased (training) variance
    scale = gamma[:, 0] * jax.lax.rsqrt(var + eps)
    shift = beta[:, 0] - mean * scale
    scale = scale[:, None].astype(jnp.float32)             # (ndf2, 1)
    shift = shift[:, None].astype(jnp.float32)

    # Pass 2: recompute h1/h2, apply BN + LeakyReLU + output conv; fully parallel.
    out = pl.pallas_call(
        _apply_kernel,
        out_shape=jax.ShapeDtypeStruct((n, 1, hw_pad), jnp.float32),
        grid=(n, n_tiles),
        in_specs=[x_spec, resident(w1_b), resident(b1), resident(w2_b), resident(b2),
                  resident(scale), resident(shift), resident(w3), resident(b3)],
        out_specs=pl.BlockSpec((1, 1, tm), lambda b, t: (b, 0, t)),
        compiler_params=cparams,
    )(x_view, w1_b, b1, w2_b, b2, scale, shift, w3, b3)

    if hw_pad != hw:
        out = out[:, :, :hw]
    return out.reshape(n, 1, h, w)


def make_params(key, input_nc, ndf):
    """Deterministic synthetic parameters (shapes mirror the PyTorch module,
    stored channels-first: conv weights as (out, in))."""
    ks = jax.random.split(key, 6)
    w1 = 0.1 * jax.random.normal(ks[0], (ndf, input_nc), jnp.float32)
    b1 = 0.01 * jax.random.normal(ks[1], (ndf, 1), jnp.float32)
    w2 = 0.1 * jax.random.normal(ks[2], (2 * ndf, ndf), jnp.float32)
    b2 = 0.01 * jax.random.normal(ks[3], (2 * ndf, 1), jnp.float32)
    gamma = jnp.ones((2 * ndf, 1), jnp.float32)   # BatchNorm2d default weight
    beta = jnp.zeros((2 * ndf, 1), jnp.float32)   # BatchNorm2d default bias
    w3 = 0.1 * jax.random.normal(ks[4], (2 * ndf, 1), jnp.float32)
    b3 = 0.01 * jax.random.normal(ks[5], (1, 1), jnp.float32)
    return (w1, b1, w2, b2, gamma, beta, w3, b3)


def _reference(x_nchw, params):
    """Pure-JAX f32 reference (training-mode BatchNorm) for the correctness check."""
    w1, b1, w2, b2, gamma, beta, w3, b3 = params
    n, c, h, w = x_nchw.shape
    x = x_nchw.reshape(n, c, h * w).astype(jnp.float32)
    h1 = jnp.einsum("oc,nci->noi", w1, x) + b1[None]
    h1 = jnp.where(h1 >= 0, h1, 0.2 * h1)
    h2 = jnp.einsum("oc,nci->noi", w2, h1) + b2[None]
    mean = jnp.mean(h2, axis=(0, 2), keepdims=True)
    var = jnp.mean((h2 - mean) ** 2, axis=(0, 2), keepdims=True)
    h2n = (h2 - mean) * jax.lax.rsqrt(var + 1e-5) * gamma[None] + beta[None]
    h2n = jnp.where(h2n >= 0, h2n, 0.2 * h2n)
    out = jnp.einsum("co,nci->noi", w3, h2n) + b3[None]
    return out.reshape(n, 1, h, w)


if __name__ == "__main__":
    key = jax.random.PRNGKey(0)
    kx, kp = jax.random.split(key)

    N, C_IN, H, W = 2, 4, 16, 16
    NDF = 16

    x = jax.random.normal(kx, (N, C_IN, H, W), jnp.float32)
    params = make_params(kp, C_IN, NDF)
    ref = _reference(x, params)

    # Small tile so the multi-tile parallel grid + combine path is exercised.
    out_small = jax.block_until_ready(pixel_discriminator(x, params, tm_max=128))
    # Default generation-aware tile (single tile covering the whole image here).
    out_big = jax.block_until_ready(pixel_discriminator(x, params))

    for out in (out_small, out_big):
        assert out.shape == (N, 1, H, W), out.shape
        err = float(jnp.max(jnp.abs(out - ref)))
        # Tolerance relaxed for bf16 MXU operands (BN stats stay f32).
        assert err < 4e-2, f"mismatch vs reference, max abs err = {err}"

    print("KERNEL_OK")
</pallas_src>

<mosaic_0001>
module attributes {stable_mosaic.version = 11 : i64} {
  func.func @_stats_kernel(%arg0: i32, %arg1: i32, %arg2: memref<1x4x128xf32, #tpu.memory_space<vmem>>, %arg3: memref<16x4xbf16, #tpu.memory_space<vmem>>, %arg4: memref<16x1xf32, #tpu.memory_space<vmem>>, %arg5: memref<32x16xbf16, #tpu.memory_space<vmem>>, %arg6: memref<32x1xf32, #tpu.memory_space<vmem>>, %arg7: memref<1x1x64x128xf32, #tpu.memory_space<vmem>>) attributes {dimension_semantics = [#tpu.dimension_semantics<parallel>, #tpu.dimension_semantics<parallel>], iteration_bounds = array<i64: 2, 2>, scalar_prefetch = 0 : i64, scratch_operands = 0 : i64, tpu.core_type = #tpu.core_type<tc>, window_params = [{transform_indices = @transform_0, window_bounds = array<i64: 1, 4, 128>}, {pipeline_mode = #tpu.pipeline_mode<synchronous>, transform_indices = @transform_1, window_bounds = array<i64: 16, 4>}, {pipeline_mode = #tpu.pipeline_mode<synchronous>, transform_indices = @transform_2, window_bounds = array<i64: 16, 1>}, {pipeline_mode = #tpu.pipeline_mode<synchronous>, transform_indices = @transform_3, window_bounds = array<i64: 32, 16>}, {pipeline_mode = #tpu.pipeline_mode<synchronous>, transform_indices = @transform_4, window_bounds = array<i64: 32, 1>}, {transform_indices = @transform_5, window_bounds = array<i64: 1, 1, 64, 128>}]} {
    %c0 = arith.constant 0 : index
    %c0_0 = arith.constant 0 : index
    %c0_1 = arith.constant 0 : index
    %0 = vector.load %arg2[%c0, %c0_0, %c0_1] : memref<1x4x128xf32, #tpu.memory_space<vmem>>, vector<1x4x128xf32>
    %1 = vector.shape_cast %0 : vector<1x4x128xf32> to vector<4x128xf32>
    %c0_2 = arith.constant 0 : index
    %c0_3 = arith.constant 0 : index
    %2 = vector.load %arg3[%c0_2, %c0_3] : memref<16x4xbf16, #tpu.memory_space<vmem>>, vector<16x4xbf16>
    %3 = arith.truncf %1 : vector<4x128xf32> to vector<4x128xbf16>
    %cst = arith.constant dense<0.000000e+00> : vector<16x128xf32>
    %4 = tpu.matmul %2, %3, %cst {dimension_numbers = #tpu.dot_dimension_numbers<[1], [0], [0], [1], [0, 0, 1, 1], [], []>} : vector<16x4xbf16>, vector<4x128xbf16>, vector<16x128xf32> -> vector<16x128xf32>
    %c0_4 = arith.constant 0 : index
    %c0_5 = arith.constant 0 : index
    %5 = vector.load %arg4[%c0_4, %c0_5] : memref<16x1xf32, #tpu.memory_space<vmem>>, vector<16x1xf32>
    %6 = vector.broadcast %5 : vector<16x1xf32> to vector<16x128xf32>
    %7 = arith.addf %4, %6 : vector<16x128xf32>
    %cst_6 = arith.constant 0.000000e+00 : f32
    %8 = vector.broadcast %cst_6 : f32 to vector<16x128xf32>
    %9 = arith.cmpf oge, %7, %8 : vector<16x128xf32>
    %cst_7 = arith.constant 2.000000e-01 : f32
    %10 = vector.broadcast %cst_7 : f32 to vector<16x128xf32>
    %11 = arith.mulf %10, %7 : vector<16x128xf32>
    %12 = arith.select %9, %7, %11 : vector<16x128xi1>, vector<16x128xf32>
    %c0_8 = arith.constant 0 : index
    %c0_9 = arith.constant 0 : index
    %13 = vector.load %arg5[%c0_8, %c0_9] : memref<32x16xbf16, #tpu.memory_space<vmem>>, vector<32x16xbf16>
    %14 = arith.truncf %12 : vector<16x128xf32> to vector<16x128xbf16>
    %cst_10 = arith.constant dense<0.000000e+00> : vector<32x128xf32>
    %15 = tpu.matmul %13, %14, %cst_10 {dimension_numbers = #tpu.dot_dimension_numbers<[1], [0], [0], [1], [0, 0, 1, 1], [], []>} : vector<32x16xbf16>, vector<16x128xbf16>, vector<32x128xf32> -> vector<32x128xf32>
    %c0_11 = arith.constant 0 : index
    %c0_12 = arith.constant 0 : index
    %16 = vector.load %arg6[%c0_11, %c0_12] : memref<32x1xf32, #tpu.memory_space<vmem>>, vector<32x1xf32>
    %17 = vector.broadcast %16 : vector<32x1xf32> to vector<32x128xf32>
    %18 = arith.addf %15, %17 : vector<32x128xf32>
    %19 = arith.mulf %18, %18 : vector<32x128xf32>
    %c0_13 = arith.constant 0 : index
    %c0_14 = arith.constant 0 : index
    %c0_15 = arith.constant 0 : index
    %c0_16 = arith.constant 0 : index
    %20 = vector.load %arg7[%c0_13, %c0_14, %c0_15, %c0_16] : memref<1x1x64x128xf32, #tpu.memory_space<vmem>>, vector<1x1x32x128xf32>
    %21 = vector.shape_cast %20 : vector<1x1x32x128xf32> to vector<32x128xf32>
    %22 = vector.shape_cast %18 : vector<32x128xf32> to vector<1x1x32x128xf32>
    tpu.vector_store %arg7[%c0_13, %c0_14, %c0_15, %c0_16], %22 {strides = array<i32>} : memref<1x1x64x128xf32, #tpu.memory_space<vmem>>, vector<1x1x32x128xf32>,
    %c0_17 = arith.constant 0 : index
    %c0_18 = arith.constant 0 : index
    %c32 = arith.constant 32 : index
    %c0_19 = arith.constant 0 : index
    %23 = vector.load %arg7[%c0_17, %c0_18, %c32, %c0_19] : memref<1x1x64x128xf32, #tpu.memory_space<vmem>>, vector<1x1x32x128xf32>
    %24 = vector.shape_cast %23 : vector<1x1x32x128xf32> to vector<32x128xf32>
    %25 = vector.shape_cast %19 : vector<32x128xf32> to vector<1x1x32x128xf32>
    tpu.vector_store %arg7[%c0_17, %c0_18, %c32, %c0_19], %25 {strides = array<i32>} : memref<1x1x64x128xf32, #tpu.memory_space<vmem>>, vector<1x1x32x128xf32>,
    return
  }
  func.func @transform_0(%arg0: i32, %arg1: i32) -> (i32, i32, i32) {
    %c0_i32 = arith.constant 0 : i32
    %c0_i32_0 = arith.constant 0 : i32
    return %arg0, %c0_i32, %arg1 : i32, i32, i32
  }
  func.func @transform_1(%arg0: i32, %arg1: i32) -> (i32, i32) {
    %c0_i32 = arith.constant 0 : i32
    %c0_i32_0 = arith.constant 0 : i32
    %c0_i32_1 = arith.constant 0 : i32
    return %c0_i32, %c0_i32_0 : i32, i32
  }
  func.func @transform_2(%arg0: i32, %arg1: i32) -> (i32, i32) {
    %c0_i32 = arith.constant 0 : i32
    %c0_i32_0 = arith.constant 0 : i32
    %c0_i32_1 = arith.constant 0 : i32
    return %c0_i32, %c0_i32_0 : i32, i32
  }
  func.func @transform_3(%arg0: i32, %arg1: i32) -> (i32, i32) {
    %c0_i32 = arith.constant 0 : i32
    %c0_i32_0 = arith.constant 0 : i32
    %c0_i32_1 = arith.constant 0 : i32
    return %c0_i32, %c0_i32_0 : i32, i32
  }
  func.func @transform_4(%arg0: i32, %arg1: i32) -> (i32, i32) {
    %c0_i32 = arith.constant 0 : i32
    %c0_i32_0 = arith.constant 0 : i32
    %c0_i32_1 = arith.constant 0 : i32
    return %c0_i32, %c0_i32_0 : i32, i32
  }
  func.func @transform_5(%arg0: i32, %arg1: i32) -> (i32, i32, i32, i32) {
    %c0_i32 = arith.constant 0 : i32
    %c0_i32_0 = arith.constant 0 : i32
    %c0_i32_1 = arith.constant 0 : i32
    return %arg0, %arg1, %c0_i32, %c0_i32_0 : i32, i32, i32, i32
  }
}

</mosaic_0001>

<bundles_post_ra>
// kernel: tpu_custom_call.1
= control target key start
LH: loop header
LB: loop body
LE: loop exit
PB: predicated region body
PF: predicated region fallthrough
CT: control target
= control target key end

     0   :  { %10 = vsyncpa [#allocation3], 0  ;;  %s950_s0 = inlined_call_operand.vmem [shape: f32[2,4,256], index: 0, kind: input, shape index: {}]   ;;  %s951_s1 = inlined_call_operand.vmem [shape: bf16[16,4], index: 1, kind: input, shape index: {}]   ;;  %s952_s2 = inlined_call_operand.vmem [shape: f32[16,1], index: 2, kind: input, shape index: {}]   ;;  %s953_s3 = inlined_call_operand.vmem [shape: bf16[32,16], index: 3, kind: input, shape index: {}]   ;;  %s954_s4 = inlined_call_operand.vmem [shape: f32[32,1], index: 4, kind: input, shape index: {}]   ;;  %s955_s5 = inlined_call_operand.hbm [shape: f32[2,2,64,128], index: 5, kind: output, shape index: {}]  }
   0x1   :  { %12 = vsyncpa [#allocation3 + $0x1], 0  ;;  %s778_s18 = smov 0   ;;  %s780_s19 = smov 0  }
   0x2   :  { %s782_s20 = smov 0   ;;  %s784_s21 = smov 0  }
   0x3   :  { %s786_s22 = smov 0   ;;  %s788_s23 = smov 0  }
   0x4   :  { %s790_s24 = smov 0   ;;  %s792_s25 = smov 0  }
   0x5 LB: > { %s530_s26 = sadd.s32 4294967295, %s740_s25   ;;  %s531_s27 = sadd.s32 4294967294, %s740_s25   ;;  %s740_s25 = sphi %s792_s25, %s18_s25   ;;  %s736_s24 = sphi %s790_s24, %s967_s24   ;;  %s732_s23 = sphi %s788_s23, %s966_s23   ;;  %s728_s22 = sphi %s786_s22, %s965_s22   ;;  %s724_s21 = sphi %s784_s21, %s964_s21   ;;  %s720_s20 = sphi %s782_s20, %s963_s20   ;;  %s716_s19 = sphi %s780_s19, %s962_s19   ;;  %s712_s18 = sphi %s778_s18, %s961_s18  }
   0x6   : > { %s27_s28 = sadd.s32 1, %s732_s23  ;;  %s30_s29 = sadd.s32 1, %s736_s24 }
   0x7   : > { %p28_p0 = scmp.ge.s32.totalorder %s27_s28, 2  ;;  %p161_p1 = scmp.ne.s32.totalorder %s720_s20, %s716_s19 }
   0x8   : > { %p162_p2 = scmp.eq.s32.totalorder %s530_s26, 3  ;;  %p167_p5 = scmp.ne.s32.totalorder %s716_s19, %s712_s18 }
   0x9   : > { %s969_s28 = smov (%p28_p0, %s27_s28), 0  ;;  %s971_s29 = smov (!%p28_p0, %s30_s29), %s736_s24 }
   0xa   : > { %s147_s30 = ssub.s32 %s732_s23, %s969_s28  ;;  %p829_p3 = por %p162_p2, %p161_p1 }
   0xb   : > { %p32_p4 = scmp.ge.s32.totalorder %s971_s29, 2  ;;  %p168_p6 = scmp.eq.s32.totalorder %s531_s27, 3 }
   0xc   : > { %p534_p7 = scmp.ge.s32.totalorder %s740_s25, 1  ;;  %p209_p9 = scmp.lt.s32.totalorder %s740_s25, 5 }
   0xd   : > { %s973_s29 = smov (%p32_p4, %s971_s29), 0  ;;  %p838_p8 = por %p168_p6, %p167_p5 }
   0xe   : > { %958 = sst [smem:[#allocation5_spill]] %s973_s29  ;;  %s146_s8 = ssub.s32 %s736_s24, %s973_s29 }
   0xf   : > { %s151_s9 = sadd.s32 1, %s720_s20  ;;  %s148_s10 = sor.u32 %s147_s30, %s146_s8 }
  0x10   : > { %p210_p10 = pnand %p534_p7, %p209_p9  ;;  %p149_p11 = scmp.eq.s32.totalorder %s148_s10, 0 }
  0x11   : > { %p240_p12 = scmp.lt.s32.totalorder (!%p210_p10), %s728_s22, 1  ;;  %p242_p13 = scmp.lt.s32.totalorder (!%p210_p10), %s724_s21, 1 }
  0x12   : > { %s847_s11 = scalar_select %p149_p11, %s720_s20, %s151_s9  }
  0x13   : > { %213 = sbr.rel (%p210_p10) target bundleno = 462 (0x1ce), region = 40  ;;  %s237_s13 = sand.u32 (!%p210_p10), 1, %s716_s19  }
  0x14   : > { %s545_s14 = sshll.u32 (!%p210_p10), %s724_s21, 3  ;;  %s745_s9 = smov (!%p210_p10), [#allocation2]  }
  0x18   : > { %v742_v0 = vmov 0.0   ;;  %vm743_vm0 = vmmov 0   ;;  %s241_s12 = scalar_select %p240_p12, %s728_s22, 1  ;;  %v744_v1 = vmov 0   ;;  %v253_v2 = vld [vmem:[%s952_s2] sm:$0xff]  ;;  %v254_v3 = vld [vmem:[%s952_s2 + $0x8] sm:$0xff] }
  0x19   : > { %555 = vmatprep.subr.bf16.mxu0 %v742_v0  ;;  %557 = vmatprep.mubr.msk.bf16.mxu0 %vm743_vm0, %v742_v0  ;;  %s243_s15 = scalar_select %p242_p13, %s724_s21, 1  ;;  %vm274_vm1 = vcmask 1041408   ;;  %v332_v5 = vld [vmem:[%s954_s4 + $0x10] sm:$0xff]  ;;  %v645_v8 = vld [vmem:[%s951_s1] sm:$0xff]   ;;  %vm270_vm2 = vcmask 31744   ;;  %vm364_vm3 = vcmask 130048  }
  0x1a   : > { %643 = vset.pattern.permute.xlu0 %v744_v1  ;;  %644 = vset.pattern.permute.xlu1 %v744_v1  ;;  %s536_s16 = sshll.u32 %s241_s12, 1  ;;  %v646_v9 = vld [vmem:[%s953_s3] sm:$0xff]   ;;  %v331_v11 = vld [vmem:[%s954_s4 + $0x8] sm:$0xff]  ;;  %v333_v12 = vld [vmem:[%s954_s4 + $0x18] sm:$0xff]  ;;  %s535_s12 = sshll.u32 %s237_s13, 6 }
  0x1b   : > { %257 = vperm.xlu0 %643, %v253_v2   ;;  %s245_s27 = sadd.s32 %s536_s16, %s243_s15  ;;  %563 = vmatprep.mubr.msk.bf16.mxu1 %vm364_vm3, %v646_v9  ;;  %v330_v10 = vld [vmem:[%s954_s4] sm:$0xff]  ;;  %v647_v26 = vld [vmem:[%s953_s3 + $0x8] sm:$0xff]   ;;  %s546_s15 = sshll.u32 %s728_s22, 4 }
  0x1c   : > { %s537_s30 = sshll.u32 %s245_s27, 2  ;;  %336 = vperm.xlu1 %644, %v330_v10   ;;  %s445_s16 = sadd.s32 %s546_s15, %s545_s14 }
  0x1d   : > { %s247_s10 = scalar_lea.vmem %s950_s0, %s537_s30  ;;  %s239_s17 = scalar_lea.vmem [#allocation2], %s535_s12 }
  0x1e   : > { %v249_v4 = vld [vmem:[%s247_s10] sm:$0xf]  ;;  %s547_s29 = sshll.u32 %s445_s16, 7  ;;  %s448_s21 = sshll.u32 %s239_s17, 4  ;;  %s895_s21 = int_to_ptr.vmem [resolvable:$true] %s448_s21 }
  0x1f   : > { %262 = vperm.xlu0 %643, %v254_v3   ;;  %v252_v6 = vpack.c.bf16 %v249_v4, %v249_v4  ;;  %s893_s27 = scalar_lea.hbm %s955_s5, %s547_s29  ;;  %s899_s30 = scalar_lea.sflag [#allocation3], %s237_s13 }
  0x20   : > { %341 = vperm.xlu1 %644, %v331_v11   ;;  %s648_s8 = scalar_lea.vmem %s895_s21, 1024  ;;  %s652_s10 = sshll.u32 %s745_s9, 4  ;;  %s653_s10 = int_to_ptr.vmem [resolvable:$false] %s652_s10 }
  0x21   : > { %v276_v7 = vsel %vm274_vm1, %v252_v6, 0  ;;  %p649_p0 = scmp.ne.s32.totalorder %s895_s21, %s648_s8  ;;  %s654_s12 = scalar_lea.vmem %s653_s10, 2048 }
  0x22   : > { %556 = vmatpush3.bf16.msra.mxu0 %v276_v7  ;;  %p655_p4 = scmp.lt.s32.totalorder %s895_s21, %s653_s10  ;;  %p656_p5 = scmp.lt.s32.totalorder %s654_s12, %s648_s8 }
  0x23   : > { %346 = vperm.xlu0 %643, %v332_v5   ;;  %p650_p1 = pnand %p649_p0, %p829_p3 }
  0x24   : > { %351 = vperm.xlu1 %644, %v333_v12   ;;  %p657_p6 = por %p656_p5, %p655_p4 }
  0x25   : > { %558 = vmatmul.mubr.msk.bf16.vlgmr.msra.gmra.mxu0 %vm270_vm2, %v645_v8  ;;  %p651_p2 = pneg %p650_p1 }
  0x27   : > { %p658_p7 = pnand %p657_p6, %p651_p2 }
  0x96   : > { %v258_v13 = vpop.permute.xlu0 %257 }
  0x97   : > { %v337_v27 = vpop.permute.xlu1 %336 }
  0x9a   : > { %v263_v17 = vpop.permute.xlu0 %262 }
  0x9b   : > { %v342_v28 = vpop.permute.xlu1 %341 }
  0x9e   : > { %v347_v29 = vpop.permute.xlu0 %346 }
  0x9f   : > { %v352_v35 = vpop.permute.xlu1 %351 }
  0xe5   : > { %v312_v14 = vpop.f32.mrf.mxu0 }
  0xe6   : > { %v313_v15 = vadd.f32 %v312_v14, %v258_v13 }
  0xe7   : > { %v559_v16 = vpop.f32.mrf.mxu0 }
  0xe8   : > { %v321_v19 = vmul.f32 0.2, %v313_v15  ;;  %vm319_vm4 = vcmp.ge.f32.partialorder %v313_v15, 0.0 }
  0xe9   : > { %v315_v18 = vpop.f32.mrf.mxu0 }
  0xea   : > { %v316_v20 = vadd.f32 %v315_v18, %v263_v17  ;;  %v323_v23 = vsel %vm319_vm4, %v313_v15, %v321_v19 }
  0xeb   : > { %v560_v21 = vpop.f32.mrf.mxu0 }
  0xec   : > { %v322_v22 = vmul.f32 0.2, %v316_v20  ;;  %vm320_vm5 = vcmp.ge.f32.partialorder %v316_v20, 0.0 }
  0xee   : > { %v324_v24 = vsel %vm320_vm5, %v316_v20, %v322_v22 }
  0xef   : > { %v329_v25 = vpack.c.bf16 %v324_v24, %v323_v23 }
  0xf1   : > { %561 = vmatprep.subr.bf16.mxu1 %v329_v25 }
  0xf2   : > { %562 = vmatpush3.bf16.msra.mxu1 %v329_v25 }
  0xf5   : > { %564 = vmatmul.mubr.msk.bf16.vlgmr.msra.gmra.mxu1 %vm364_vm3, %v647_v26 }
 0x1b5   : > { %v565_v30 = vpop.f32.mrf.mxu1 }
 0x1b6   : > { %v414_v31 = vadd.f32 %v565_v30, %v347_v29 }
 0x1b7   : > { %v405_v32 = vpop.f32.mrf.mxu1 }
 0x1b8   : > { %v422_v33 = vmul.f32 %v414_v31, %v414_v31  ;;  %426 = vst [vmem:[%s239_s17 + $0x10] sm:$0xff] %v414_v31  ;;  %v406_v34 = vadd.f32 %v405_v32, %v337_v27 }
 0x1b9   : > { %v566_v36 = vpop.f32.mrf.mxu1 }
 0x1ba   : > { %430 = vst [vmem:[%s239_s17 + $0x30] sm:$0xff] %v422_v33  ;;  %v420_v37 = vmul.f32 %v406_v34, %v406_v34  ;;  %424 = vst [vmem:[%s239_s17] sm:$0xff] %v406_v34  ;;  %v417_v38 = vadd.f32 %v566_v36, %v352_v35 }
 0x1bb   : > { %v408_v39 = vpop.f32.mrf.mxu1 }
 0x1bc   : > { %428 = vst [vmem:[%s239_s17 + $0x20] sm:$0xff] %v420_v37  ;;  %v423_v40 = vmul.f32 %v417_v38, %v417_v38  ;;  %427 = vst [vmem:[%s239_s17 + $0x18] sm:$0xff] %v417_v38  ;;  %v409_v41 = vadd.f32 %v408_v39, %v342_v28 }
 0x1be   : > { %431 = vst [vmem:[%s239_s17 + $0x38] sm:$0xff] %v423_v40  ;;  %v421_v42 = vmul.f32 %v409_v41, %v409_v41  ;;  %425 = vst [vmem:[%s239_s17 + $0x8] sm:$0xff] %v409_v41 }
 0x1c0   : > { %429 = vst [vmem:[%s239_s17 + $0x28] sm:$0xff] %v421_v42 }
 0x1c1   : > { %661 = shalt.err (!%p658_p7)
}
 0x1c2   : > { %s662_s13 = scalar_lea.hbm %s893_s27, 1024  ;;  %s666_s16 = scalar_lea.hbm %s955_s5, 4096 }
 0x1c3   : > { %p663_p9 = scmp.ne.s32.totalorder %s893_s27, %s662_s13  ;;  %p667_p12 = scmp.lt.s32.totalorder %s893_s27, %s955_s5 }
 0x1c4   : > { %p668_p13 = scmp.lt.s32.totalorder %s666_s16, %s662_s13 }
 0x1c5   : > { %p664_p10 = pnand %p663_p9, %p829_p3 }
 0x1c6   : > { %p669_p0 = por %p668_p13, %p667_p12 }
 0x1c7   : > { %p665_p11 = pneg %p664_p10 }
 0x1c9   : > { %p670_p1 = pnand %p669_p0, %p665_p11 }
 0x1cb   : > { %673 = shalt.err (!%p670_p1)
}
 0x1cc   : > { %s746_s22 = smov 128   ;;  %s747_s26 = smov 8  }
 0x1cd   : > { %567 = dma.vmem_to_hbm [thread:$0]  (%p829_p3), %s895_s21, 1024, %s893_s27, %s899_s30, %s746_s22, %s746_s22, %s747_s26  }
 0x1ce PF: > { %p573_p2 = scmp.ge.s32.totalorder %s740_s25, 2  ;;  %s463_s8 = sand.u32 1, %s712_s18  }
 0x1cf   : > { %s464_s9 = scalar_lea.sflag [#allocation3], %s463_s8 }
 0x1d0   : > { %p570_p4 = pnand %p573_p2, %p838_p8 }
 0x1d2   : > { %p571_p5 = pneg %p570_p4 }
 0x1d4   : > { %707 = dma.done.wait (%p571_p5), %s464_s9, 1024  }
 0x1d5   : > { %709 = vsyncadd (%p571_p5), %s464_s9, 4294966272  ;;  %s18_s25 = sadd.s32 1, %s740_s25   ;;  %s960_s6 = sld [smem:[#allocation5_spill]] }
 0x1d6   : > { %p15_p6 = scmp.ge.s32.totalorder %s18_s25, 6   ;;  %s961_s18 = smov %s716_s19 }
 0x1d7   : > { %s962_s19 = smov %s720_s20  ;;  %s963_s20 = smov %s847_s11 }
 0x1d8   : > { %s964_s21 = smov %s732_s23  ;;  %s965_s22 = smov %s736_s24 }
 0x1d9   : > { %s966_s23 = smov %s969_s28  ;;  %17 = sbr.rel (!%p15_p6) target bundleno = 5 (0x5), region = 75 }
 0x1db   : > { %s967_s24 = smov %s960_s6 }
 0x1de   :  { %469 = vsyncpa [#allocation3], 1 }
 0x1df   :  { %471 = vsyncpa [#allocation3 + $0x1], 1 }

</bundles_post_ra>
